<compile_context>
chip_gen: v7x
topology: tpu7x:2x2x1
jax: 0.10.0
libtpu: 0.0.40
codegen_flags: <defaults>
</compile_context>

<pallas_src>
import jax
import jax.numpy as jnp
from jax.experimental import pallas as pl
from jax.experimental.pallas import tpu as pltpu

VOCAB = 10
EMBED_DIM = 3
LANE_PAD = 128  # pad embedding dim to one full lane group for dense stores


def embed_kernel(idx_ref, table_ref, out_ref):
    # idx_ref:   (N, 1) int32          -- flattened token indices
    # table_ref: (VOCAB, LANE_PAD) f32 -- embedding table, lane-padded
    # out_ref:   (N, LANE_PAD) f32     -- gathered embeddings, lane-padded
    idx = idx_ref[...]  # (N, 1)
    vocab = table_ref.shape[0]

    # VPU select-accumulate gather: 10 unrolled FMAs on a single-vreg-wide
    # tile.  mask (N,1) broadcasts against row (1, LANE_PAD).
    acc = jnp.zeros(out_ref.shape, dtype=jnp.float32)
    for v in range(vocab):  # static, fully unrolled (vocab = 10)
        row = table_ref[pl.ds(v, 1), :]          # (1, LANE_PAD)
        mask = (idx == v).astype(jnp.float32)    # (N, 1)
        acc = acc + mask * row                   # (N, LANE_PAD)
    out_ref[...] = acc


def embedding_forward(indices, table):
    """indices: (B, S) int32, table: (VOCAB, D) f32 -> (B, S, D) f32."""
    B, S = indices.shape
    V, D = table.shape
    N = B * S

    idx_flat = indices.reshape(N, 1).astype(jnp.int32)
    # Lane-pad the table once on the host graph so all in-kernel tiles are
    # 128-lane dense (zero columns beyond D contribute zeros to the output).
    table_padded = jnp.zeros((V, LANE_PAD), jnp.float32).at[:, :D].set(table)

    out_padded = pl.pallas_call(
        embed_kernel,
        out_shape=jax.ShapeDtypeStruct((N, LANE_PAD), jnp.float32),
        in_specs=[
            pl.BlockSpec(memory_space=pltpu.MemorySpace.VMEM),
            pl.BlockSpec(memory_space=pltpu.MemorySpace.VMEM),
        ],
        out_specs=pl.BlockSpec(memory_space=pltpu.MemorySpace.VMEM),
    )(idx_flat, table_padded)

    return out_padded[:, :D].reshape(B, S, D)


if __name__ == "__main__":
    key = jax.random.PRNGKey(0)
    k_w, k_x = jax.random.split(key)

    # Deterministic parameter init (nn.Embedding default: N(0, 1)).
    embed_weight = jax.random.normal(k_w, (VOCAB, EMBED_DIM), dtype=jnp.float32)

    # Small input consistent with an embedding lookup: batch=2, seq=8.
    x = jax.random.randint(k_x, (2, 8), minval=0, maxval=VOCAB, dtype=jnp.int32)

    out = embedding_forward(x, embed_weight)
    out = jax.block_until_ready(out)

    # Sanity check against the pure-JAX reference gather.
    ref = jnp.take(embed_weight, x, axis=0)
    assert out.shape == (2, 8, EMBED_DIM), out.shape
    assert jnp.allclose(out, ref, atol=1e-6), "mismatch vs reference gather"

    print("KERNEL_OK")
</pallas_src>

<mosaic_0001>
module attributes {stable_mosaic.version = 11 : i64} {
  func.func @embed_kernel(%arg0: memref<16x1xi32, #tpu.memory_space<vmem>>, %arg1: memref<10x128xf32, #tpu.memory_space<vmem>>, %arg2: memref<16x128xf32, #tpu.memory_space<vmem>>) attributes {dimension_semantics = [], scalar_prefetch = 0 : i64, scratch_operands = 0 : i64, tpu.core_type = #tpu.core_type<tc>} {
    %c0 = arith.constant 0 : index
    %c0_0 = arith.constant 0 : index
    %0 = vector.load %arg0[%c0, %c0_0] : memref<16x1xi32, #tpu.memory_space<vmem>>, vector<16x1xi32>
    %cst = arith.constant 0.000000e+00 : f32
    %1 = vector.broadcast %cst : f32 to vector<16x128xf32>
    %c0_1 = arith.constant 0 : index
    %c0_2 = arith.constant 0 : index
    %2 = vector.load %arg1[%c0_1, %c0_2] : memref<10x128xf32, #tpu.memory_space<vmem>>, vector<1x128xf32>
    %c0_i32 = arith.constant 0 : i32
    %3 = vector.broadcast %c0_i32 : i32 to vector<16x1xi32>
    %4 = arith.cmpi eq, %0, %3 : vector<16x1xi32>
    %5 = arith.extui %4 : vector<16x1xi1> to vector<16x1xi32>
    %6 = arith.sitofp %5 : vector<16x1xi32> to vector<16x1xf32>
    %7 = vector.broadcast %6 : vector<16x1xf32> to vector<16x128xf32>
    %8 = vector.broadcast %2 : vector<1x128xf32> to vector<16x128xf32>
    %9 = arith.mulf %7, %8 : vector<16x128xf32>
    %10 = arith.addf %1, %9 : vector<16x128xf32>
    %c1 = arith.constant 1 : index
    %c0_3 = arith.constant 0 : index
    %11 = vector.load %arg1[%c1, %c0_3] : memref<10x128xf32, #tpu.memory_space<vmem>>, vector<1x128xf32>
    %c1_i32 = arith.constant 1 : i32
    %12 = vector.broadcast %c1_i32 : i32 to vector<16x1xi32>
    %13 = arith.cmpi eq, %0, %12 : vector<16x1xi32>
    %14 = arith.extui %13 : vector<16x1xi1> to vector<16x1xi32>
    %15 = arith.sitofp %14 : vector<16x1xi32> to vector<16x1xf32>
    %16 = vector.broadcast %15 : vector<16x1xf32> to vector<16x128xf32>
    %17 = vector.broadcast %11 : vector<1x128xf32> to vector<16x128xf32>
    %18 = arith.mulf %16, %17 : vector<16x128xf32>
    %19 = arith.addf %10, %18 : vector<16x128xf32>
    %c2 = arith.constant 2 : index
    %c0_4 = arith.constant 0 : index
    %20 = vector.load %arg1[%c2, %c0_4] : memref<10x128xf32, #tpu.memory_space<vmem>>, vector<1x128xf32>
    %c2_i32 = arith.constant 2 : i32
    %21 = vector.broadcast %c2_i32 : i32 to vector<16x1xi32>
    %22 = arith.cmpi eq, %0, %21 : vector<16x1xi32>
    %23 = arith.extui %22 : vector<16x1xi1> to vector<16x1xi32>
    %24 = arith.sitofp %23 : vector<16x1xi32> to vector<16x1xf32>
    %25 = vector.broadcast %24 : vector<16x1xf32> to vector<16x128xf32>
    %26 = vector.broadcast %20 : vector<1x128xf32> to vector<16x128xf32>
    %27 = arith.mulf %25, %26 : vector<16x128xf32>
    %28 = arith.addf %19, %27 : vector<16x128xf32>
    %c3 = arith.constant 3 : index
    %c0_5 = arith.constant 0 : index
    %29 = vector.load %arg1[%c3, %c0_5] : memref<10x128xf32, #tpu.memory_space<vmem>>, vector<1x128xf32>
    %c3_i32 = arith.constant 3 : i32
    %30 = vector.broadcast %c3_i32 : i32 to vector<16x1xi32>
    %31 = arith.cmpi eq, %0, %30 : vector<16x1xi32>
    %32 = arith.extui %31 : vector<16x1xi1> to vector<16x1xi32>
    %33 = arith.sitofp %32 : vector<16x1xi32> to vector<16x1xf32>
    %34 = vector.broadcast %33 : vector<16x1xf32> to vector<16x128xf32>
    %35 = vector.broadcast %29 : vector<1x128xf32> to vector<16x128xf32>
    %36 = arith.mulf %34, %35 : vector<16x128xf32>
    %37 = arith.addf %28, %36 : vector<16x128xf32>
    %c4 = arith.constant 4 : index
    %c0_6 = arith.constant 0 : index
    %38 = vector.load %arg1[%c4, %c0_6] : memref<10x128xf32, #tpu.memory_space<vmem>>, vector<1x128xf32>
    %c4_i32 = arith.constant 4 : i32
    %39 = vector.broadcast %c4_i32 : i32 to vector<16x1xi32>
    %40 = arith.cmpi eq, %0, %39 : vector<16x1xi32>
    %41 = arith.extui %40 : vector<16x1xi1> to vector<16x1xi32>
    %42 = arith.sitofp %41 : vector<16x1xi32> to vector<16x1xf32>
    %43 = vector.broadcast %42 : vector<16x1xf32> to vector<16x128xf32>
    %44 = vector.broadcast %38 : vector<1x128xf32> to vector<16x128xf32>
    %45 = arith.mulf %43, %44 : vector<16x128xf32>
    %46 = arith.addf %37, %45 : vector<16x128xf32>
    %c5 = arith.constant 5 : index
    %c0_7 = arith.constant 0 : index
    %47 = vector.load %arg1[%c5, %c0_7] : memref<10x128xf32, #tpu.memory_space<vmem>>, vector<1x128xf32>
    %c5_i32 = arith.constant 5 : i32
    %48 = vector.broadcast %c5_i32 : i32 to vector<16x1xi32>
    %49 = arith.cmpi eq, %0, %48 : vector<16x1xi32>
    %50 = arith.extui %49 : vector<16x1xi1> to vector<16x1xi32>
    %51 = arith.sitofp %50 : vector<16x1xi32> to vector<16x1xf32>
    %52 = vector.broadcast %51 : vector<16x1xf32> to vector<16x128xf32>
    %53 = vector.broadcast %47 : vector<1x128xf32> to vector<16x128xf32>
    %54 = arith.mulf %52, %53 : vector<16x128xf32>
    %55 = arith.addf %46, %54 : vector<16x128xf32>
    %c6 = arith.constant 6 : index
    %c0_8 = arith.constant 0 : index
    %56 = vector.load %arg1[%c6, %c0_8] : memref<10x128xf32, #tpu.memory_space<vmem>>, vector<1x128xf32>
    %c6_i32 = arith.constant 6 : i32
    %57 = vector.broadcast %c6_i32 : i32 to vector<16x1xi32>
    %58 = arith.cmpi eq, %0, %57 : vector<16x1xi32>
    %59 = arith.extui %58 : vector<16x1xi1> to vector<16x1xi32>
    %60 = arith.sitofp %59 : vector<16x1xi32> to vector<16x1xf32>
    %61 = vector.broadcast %60 : vector<16x1xf32> to vector<16x128xf32>
    %62 = vector.broadcast %56 : vector<1x128xf32> to vector<16x128xf32>
    %63 = arith.mulf %61, %62 : vector<16x128xf32>
    %64 = arith.addf %55, %63 : vector<16x128xf32>
    %c7 = arith.constant 7 : index
    %c0_9 = arith.constant 0 : index
    %65 = vector.load %arg1[%c7, %c0_9] : memref<10x128xf32, #tpu.memory_space<vmem>>, vector<1x128xf32>
    %c7_i32 = arith.constant 7 : i32
    %66 = vector.broadcast %c7_i32 : i32 to vector<16x1xi32>
    %67 = arith.cmpi eq, %0, %66 : vector<16x1xi32>
    %68 = arith.extui %67 : vector<16x1xi1> to vector<16x1xi32>
    %69 = arith.sitofp %68 : vector<16x1xi32> to vector<16x1xf32>
    %70 = vector.broadcast %69 : vector<16x1xf32> to vector<16x128xf32>
    %71 = vector.broadcast %65 : vector<1x128xf32> to vector<16x128xf32>
    %72 = arith.mulf %70, %71 : vector<16x128xf32>
    %73 = arith.addf %64, %72 : vector<16x128xf32>
    %c8 = arith.constant 8 : index
    %c0_10 = arith.constant 0 : index
    %74 = vector.load %arg1[%c8, %c0_10] : memref<10x128xf32, #tpu.memory_space<vmem>>, vector<1x128xf32>
    %c8_i32 = arith.constant 8 : i32
    %75 = vector.broadcast %c8_i32 : i32 to vector<16x1xi32>
    %76 = arith.cmpi eq, %0, %75 : vector<16x1xi32>
    %77 = arith.extui %76 : vector<16x1xi1> to vector<16x1xi32>
    %78 = arith.sitofp %77 : vector<16x1xi32> to vector<16x1xf32>
    %79 = vector.broadcast %78 : vector<16x1xf32> to vector<16x128xf32>
    %80 = vector.broadcast %74 : vector<1x128xf32> to vector<16x128xf32>
    %81 = arith.mulf %79, %80 : vector<16x128xf32>
    %82 = arith.addf %73, %81 : vector<16x128xf32>
    %c9 = arith.constant 9 : index
    %c0_11 = arith.constant 0 : index
    %83 = vector.load %arg1[%c9, %c0_11] : memref<10x128xf32, #tpu.memory_space<vmem>>, vector<1x128xf32>
    %c9_i32 = arith.constant 9 : i32
    %84 = vector.broadcast %c9_i32 : i32 to vector<16x1xi32>
    %85 = arith.cmpi eq, %0, %84 : vector<16x1xi32>
    %86 = arith.extui %85 : vector<16x1xi1> to vector<16x1xi32>
    %87 = arith.sitofp %86 : vector<16x1xi32> to vector<16x1xf32>
    %88 = vector.broadcast %87 : vector<16x1xf32> to vector<16x128xf32>
    %89 = vector.broadcast %83 : vector<1x128xf32> to vector<16x128xf32>
    %90 = arith.mulf %88, %89 : vector<16x128xf32>
    %91 = arith.addf %82, %90 : vector<16x128xf32>
    %c0_12 = arith.constant 0 : index
    %c0_13 = arith.constant 0 : index
    %92 = vector.load %arg2[%c0_12, %c0_13] : memref<16x128xf32, #tpu.memory_space<vmem>>, vector<16x128xf32>
    tpu.vector_store %arg2[%c0_12, %c0_13], %91 {strides = array<i32>} : memref<16x128xf32, #tpu.memory_space<vmem>>, vector<16x128xf32>,
    return
  }
}

</mosaic_0001>

<bundles_post_ra>
// kernel: tpu_custom_call.1
= control target key start
LH: loop header
LB: loop body
LE: loop exit
PB: predicated region body
PF: predicated region fallthrough
CT: control target
= control target key end

     0   :  { %v393_v2 = vmov 0   ;;  %s461_s0 = inlined_call_operand.vmem [shape: s32[16,1], index: 0, kind: input, shape index: {}]   ;;  %s462_s1 = inlined_call_operand.vmem [shape: f32[10,128], index: 1, kind: input, shape index: {}]   ;;  %s463_s2 = inlined_call_operand.hbm [shape: f32[16,128], index: 2, kind: output, shape index: {}]  }
   0x1   :  { %v12_v0 = vld [vmem:[%s461_s0] sm:$0xff]  ;;  %v13_v1 = vld [vmem:[%s461_s0 + $0x8] sm:$0xff]  ;;  %328 = vset.pattern.permute.xlu1 %v393_v2  ;;  %317 = vset.pattern.permute.xlu0 %v393_v2 }
   0x2   :  { %vm65_vm0 = vcmp.eq.s32.totalorder %v12_v0, 2  ;;  %vm66_vm1 = vcmp.eq.s32.totalorder %v13_v1, 2  ;;  %vm15_vm2 = vcmp.eq.s32.totalorder %v12_v0, 0  ;;  %vm16_vm3 = vcmp.eq.s32.totalorder %v13_v1, 0 }
   0x3   :  { %7 = vsyncpa [#allocation3], 0  ;;  %v394_v3 = vmov 0.0   ;;  %vm90_vm4 = vcmp.eq.s32.totalorder %v12_v0, 3  ;;  %vm91_vm5 = vcmp.eq.s32.totalorder %v13_v1, 3  ;;  %vm40_vm6 = vcmp.eq.s32.totalorder %v12_v0, 1 }
   0x4   :  { %v288_v4 = vsel %vm65_vm0, 1.0, %v394_v3  ;;  %v289_v5 = vsel %vm66_vm1, 1.0, %v394_v3  ;;  %v282_v6 = vsel %vm15_vm2, 1.0, %v394_v3  ;;  %v283_v7 = vsel %vm16_vm3, 1.0, %v394_v3  ;;  %v284_v38 = vld [vmem:[%s462_s1] ss:$0 sm:$0xff] }
   0x5   :  { %v329_v8 = vpack.i.bf16 %v289_v5, %v288_v4  ;;  %v318_v9 = vpack.i.bf16 %v283_v7, %v282_v6  ;;  %v291_v10 = vsel %vm90_vm4, 1.0, %v394_v3  ;;  %v292_v11 = vsel %vm91_vm5, 1.0, %v394_v3  ;;  %v287_v40 = vld [vmem:[%s462_s1 + $0x1] ss:$0 sm:$0xff]  ;;  %v290_v46 = vld [vmem:[%s462_s1 + $0x2] ss:$0 sm:$0xff] }
   0x6   :  { %vm41_vm7 = vcmp.eq.s32.totalorder %v13_v1, 1  ;;  %v334_v12 = vpack.i.bf16 %v292_v11, %v291_v10  ;;  %v285_v13 = vsel %vm40_vm6, 1.0, %v394_v3  ;;  %vm140_vm8 = vcmp.eq.s32.totalorder %v12_v0, 5  ;;  %v293_v51 = vld [vmem:[%s462_s1 + $0x3] ss:$0 sm:$0xff]  ;;  %s395_s4 = smov [#allocation2]  }
   0x7   :  { %330 = vperm.xlu1 %328, %v329_v8   ;;  %319 = vperm.xlu0 %317, %v318_v9   ;;  %v286_v14 = vsel %vm41_vm7, 1.0, %v394_v3  ;;  %vm141_vm9 = vcmp.eq.s32.totalorder %v13_v1, 5  ;;  %v297_v16 = vsel %vm140_vm8, 1.0, %v394_v3  ;;  %vm115_vm10 = vcmp.eq.s32.totalorder %v12_v0, 4  ;;  %v296_v62 = vld [vmem:[%s462_s1 + $0x4] ss:$0 sm:$0xff] }
   0x8   :  { %v323_v15 = vpack.i.bf16 %v286_v14, %v285_v13  ;;  %v298_v17 = vsel %vm141_vm9, 1.0, %v394_v3  ;;  %vm116_vm11 = vcmp.eq.s32.totalorder %v13_v1, 4  ;;  %v294_v18 = vsel %vm115_vm10, 1.0, %v394_v3  ;;  %v299_v5 = vld [vmem:[%s462_s1 + $0x5] ss:$0 sm:$0xff]  ;;  %s271_s5 = sshll.u32 %s395_s4, 4  ;;  %s272_s5 = int_to_ptr.vmem [resolvable:$true] %s271_s5 }
   0x9   :  { %vm190_vm12 = vcmp.eq.s32.totalorder %v12_v0, 7  ;;  %v295_v19 = vsel %vm116_vm11, 1.0, %v394_v3  ;;  %vm191_vm13 = vcmp.eq.s32.totalorder %v13_v1, 7  ;;  %v344_v20 = vpack.i.bf16 %v298_v17, %v297_v16  ;;  %v302_v14 = vld [vmem:[%s462_s1 + $0x6] ss:$0 sm:$0xff]  ;;  %s369_s6 = scalar_lea.vmem %s272_s5, 256  ;;  %p374_p1 = scmp.lt.s32.totalorder %s272_s5, %s272_s5 }
   0xa   :  { %v339_v21 = vpack.i.bf16 %v295_v19, %v294_v18  ;;  %vm165_vm14 = vcmp.eq.s32.totalorder %v12_v0, 6  ;;  %vm166_vm15 = vcmp.eq.s32.totalorder %v13_v1, 6  ;;  %v303_v22 = vsel %vm190_vm12, 1.0, %v394_v3  ;;  %p370_p0 = scmp.ne.s32.totalorder %s272_s5, %s369_s6  ;;  %p375_p2 = scmp.lt.s32.totalorder %s369_s6, %s369_s6 }
   0xb   :  { %335 = vperm.xlu1 %328, %v334_v12   ;;  %324 = vperm.xlu0 %317, %v323_v15   ;;  %v304_v23 = vsel %vm191_vm13, 1.0, %v394_v3  ;;  %v300_v24 = vsel %vm165_vm14, 1.0, %v394_v3  ;;  %v301_v25 = vsel %vm166_vm15, 1.0, %v394_v3  ;;  %vm240_vm0 = vcmp.eq.s32.totalorder %v12_v0, 9 }
   0xc   :  { %vm241_vm1 = vcmp.eq.s32.totalorder %v13_v1, 9  ;;  %vm215_vm2 = vcmp.eq.s32.totalorder %v12_v0, 8  ;;  %vm216_vm3 = vcmp.eq.s32.totalorder %v13_v1, 8  ;;  %v354_v26 = vpack.i.bf16 %v304_v23, %v303_v22  ;;  %p376_p3 = por %p375_p2, %p374_p1 }
   0xd   :  { %v349_v27 = vpack.i.bf16 %v301_v25, %v300_v24  ;;  %v309_v28 = vsel %vm240_vm0, 1.0, %v394_v3  ;;  %v310_v29 = vsel %vm241_vm1, 1.0, %v394_v3  ;;  %v306_v30 = vsel %vm215_vm2, 1.0, %v394_v3 }
   0xe   :  { %v307_v31 = vsel %vm216_vm3, 1.0, %v394_v3  ;;  %v364_v32 = vpack.i.bf16 %v310_v29, %v309_v28  ;;  %p377_p4 = pnand %p376_p3, %p370_p0 }
   0xf   :  { %345 = vperm.xlu1 %328, %v344_v20   ;;  %340 = vperm.xlu0 %317, %v339_v21   ;;  %v359_v33 = vpack.i.bf16 %v307_v31, %v306_v30  ;;  %v305_v21 = vld [vmem:[%s462_s1 + $0x7] ss:$0 sm:$0xff]  ;;  %v308_v30 = vld [vmem:[%s462_s1 + $0x8] ss:$0 sm:$0xff] }
  0x13   :  { %355 = vperm.xlu1 %328, %v354_v26   ;;  %350 = vperm.xlu0 %317, %v349_v27  }
  0x17   :  { %365 = vperm.xlu1 %328, %v364_v32   ;;  %360 = vperm.xlu0 %317, %v359_v33  }
  0x86   :  { %v331_v34 = vpop.permute.xlu1 %330  ;;  %v320_v35 = vpop.permute.xlu0 %319 }
  0x87   :  { %v322_v36 = vunpack.i.h.bf16 %v320_v35  ;;  %v321_v37 = vunpack.i.l.bf16 %v320_v35  ;;  %v333_v42 = vunpack.i.h.bf16 %v331_v34  ;;  %v332_v43 = vunpack.i.l.bf16 %v331_v34 }
  0x89   :  { %v36_v49 = vmul.f32 %v322_v36, %v284_v38  ;;  %v35_v50 = vmul.f32 %v321_v37, %v284_v38  ;;  %v86_v56 = vmul.f32 %v333_v42, %v290_v46  ;;  %v85_v57 = vmul.f32 %v332_v43, %v290_v46  ;;  %v311_v37 = vld [vmem:[%s462_s1 + $0x9] ss:$0 sm:$0xff] }
  0x8a   :  { %v336_v39 = vpop.permute.xlu1 %335  ;;  %v325_v41 = vpop.permute.xlu0 %324 }
  0x8b   :  { %v327_v44 = vunpack.i.h.bf16 %v325_v41  ;;  %v326_v45 = vunpack.i.l.bf16 %v325_v41  ;;  %v338_v47 = vunpack.i.h.bf16 %v336_v39  ;;  %v337_v48 = vunpack.i.l.bf16 %v336_v39 }
  0x8d   :  { %v61_v52 = vmul.f32 %v327_v44, %v287_v40  ;;  %v60_v53 = vmul.f32 %v326_v45, %v287_v40  ;;  %v111_v60 = vmul.f32 %v338_v47, %v293_v51  ;;  %v110_v61 = vmul.f32 %v337_v48, %v293_v51 }
  0x8e   :  { %v346_v54 = vpop.permute.xlu1 %345  ;;  %v341_v55 = vpop.permute.xlu0 %340 }
  0x8f   :  { %v62_v58 = vadd.f32 %v60_v53, %v35_v50  ;;  %v63_v59 = vadd.f32 %v61_v52, %v36_v49  ;;  %v343_v63 = vunpack.i.h.bf16 %v341_v55  ;;  %v342_v0 = vunpack.i.l.bf16 %v341_v55 }
  0x90   :  { %v348_v3 = vunpack.i.h.bf16 %v346_v54  ;;  %v347_v4 = vunpack.i.l.bf16 %v346_v54 }
  0x91   :  { %v87_v1 = vadd.f32 %v85_v57, %v62_v58  ;;  %v88_v2 = vadd.f32 %v86_v56, %v63_v59  ;;  %v136_v8 = vmul.f32 %v343_v63, %v296_v62  ;;  %v135_v11 = vmul.f32 %v342_v0, %v296_v62 }
  0x92   :  { %v356_v6 = vpop.permute.xlu1 %355  ;;  %v351_v7 = vpop.permute.xlu0 %350  ;;  %v161_v17 = vmul.f32 %v348_v3, %v299_v5  ;;  %v160_v18 = vmul.f32 %v347_v4, %v299_v5 }
  0x93   :  { %v112_v9 = vadd.f32 %v110_v61, %v87_v1  ;;  %v113_v10 = vadd.f32 %v111_v60, %v88_v2  ;;  %v358_v12 = vunpack.i.h.bf16 %v356_v6  ;;  %v357_v13 = vunpack.i.l.bf16 %v356_v6 }
  0x94   :  { %v353_v15 = vunpack.i.h.bf16 %v351_v7  ;;  %v352_v16 = vunpack.i.l.bf16 %v351_v7 }
  0x95   :  { %v137_v19 = vadd.f32 %v135_v11, %v112_v9  ;;  %v138_v20 = vadd.f32 %v136_v8, %v113_v10  ;;  %v211_v28 = vmul.f32 %v358_v12, %v305_v21  ;;  %v210_v29 = vmul.f32 %v357_v13, %v305_v21 }
  0x96   :  { %v366_v22 = vpop.permute.xlu1 %365  ;;  %v361_v23 = vpop.permute.xlu0 %360  ;;  %v186_v24 = vmul.f32 %v353_v15, %v302_v14  ;;  %v185_v27 = vmul.f32 %v352_v16, %v302_v14 }
  0x97   :  { %v162_v25 = vadd.f32 %v160_v18, %v137_v19  ;;  %v163_v26 = vadd.f32 %v161_v17, %v138_v20  ;;  %v363_v31 = vunpack.i.h.bf16 %v361_v23  ;;  %v362_v32 = vunpack.i.l.bf16 %v361_v23 }
  0x98   :  { %v368_v35 = vunpack.i.h.bf16 %v366_v22  ;;  %v367_v36 = vunpack.i.l.bf16 %v366_v22 }
  0x99   :  { %v187_v33 = vadd.f32 %v185_v27, %v162_v25  ;;  %v188_v34 = vadd.f32 %v186_v24, %v163_v26  ;;  %v236_v38 = vmul.f32 %v363_v31, %v308_v30  ;;  %v235_v41 = vmul.f32 %v362_v32, %v308_v30 }
  0x9a   :  { %v261_v42 = vmul.f32 %v368_v35, %v311_v37  ;;  %v260_v43 = vmul.f32 %v367_v36, %v311_v37 }
  0x9b   :  { %v212_v39 = vadd.f32 %v210_v29, %v187_v33  ;;  %v213_v40 = vadd.f32 %v211_v28, %v188_v34 }
  0x9d   :  { %v237_v44 = vadd.f32 %v235_v41, %v212_v39  ;;  %v238_v45 = vadd.f32 %v236_v38, %v213_v40 }
  0x9f   :  { %v262_v46 = vadd.f32 %v260_v43, %v237_v44  ;;  %v263_v47 = vadd.f32 %v261_v42, %v238_v45 }
  0xa1   :  { %264 = vst [vmem:[#allocation2] sm:$0xff] %v262_v46  ;;  %265 = vst [vmem:[#allocation2 + $0x8] sm:$0xff] %v263_v47 }
  0xa2   :  { %380 = shalt.err (!%p377_p4)
}
  0xa3   :  { %s381_s8 = scalar_lea.hbm %s463_s2, 256 }
  0xa4   :  { %p382_p5 = scmp.ne.s32.totalorder %s463_s2, %s381_s8  ;;  %p385_p6 = scmp.lt.u32.totalorder %s381_s8, %s463_s2 }
  0xa6   :  { %p387_p7 = pnand %p385_p6, %p382_p5 }
  0xa8   :  { %390 = shalt.err (!%p387_p7)
}
  0xa9   :  { %s396_s0 = smov 128   ;;  %s397_s13 = smov 8  }
  0xaa   :  { %277 = dma.vmem_to_hbm [thread:$0]  %s272_s5, 256, %s463_s2, [#allocation3], %s396_s0, %s396_s0, %s397_s13  }
  0xab   :  { %391 = dma.done.wait [#allocation3], 256  }
  0xac   :  { %392 = vsyncadd [#allocation3], 4294967040 }
  0xad   :  { %281 = vsyncpa [#allocation3], 1 }

</bundles_post_ra>
